<compile_context>
chip_gen: v6e
topology: v6e:2x2x1
jax: 0.10.0
libtpu: 0.0.40
codegen_flags: <defaults>
</compile_context>

<pallas_src>
import functools

import jax
import jax.numpy as jnp
from jax import lax
from jax.experimental import pallas as pl
from jax.experimental.pallas import tpu as pltpu


def _round_up(a, b):
    return -(-a // b) * b


def _generator_kernel(n_hidden, mxu_dtype, *refs):
    # refs: x, mask_row, w_enc, b_enc, (w_i, b_i)*n_hidden, w_out_col, b_out,
    #       soft_out
    x_ref, mask_ref = refs[0], refs[1]
    w_enc_ref, b_enc_ref = refs[2], refs[3]
    hidden_refs = [(refs[4 + 2 * i], refs[5 + 2 * i]) for i in range(n_hidden)]
    w_out_ref = refs[4 + 2 * n_hidden]
    b_out_ref = refs[5 + 2 * n_hidden]
    soft_ref = refs[6 + 2 * n_hidden]

    mask = mask_ref[...]                                    # (1, TILE_N) f32

    # ---- encoder stand-in: Linear + ReLU, masked positions zeroed ----
    # TODO(synk): real Encoder is an external module; Linear+ReLU stand-in only.
    # Contract D-vs-D: (emb, D) x (TILE_N, D) -> (emb, TILE_N).  This is the
    # same transposed-RHS contraction as flash-attention's QK^T, so the MXU
    # consumes the row-major x tile directly (no HBM transpose pass).
    h = lax.dot_general(
        w_enc_ref[...], x_ref[...],
        dimension_numbers=(((1,), (1,)), ((), ())),
        preferred_element_type=jnp.float32)                 # (emb, TILE_N) f32
    h = jnp.maximum(h + b_enc_ref[...], 0.0) * mask

    # ---- sequential_block: Linear + ReLU stack (bf16 MXU, f32 accumulate) ----
    # Cast to bf16 right where the matmul operand is produced so the f32
    # intermediate dies immediately (halves live activation footprint).
    h_mm = h.astype(mxu_dtype) if n_hidden > 0 else None
    for i, (w_ref, b_ref) in enumerate(hidden_refs):
        a = jnp.dot(w_ref[...], h_mm, preferred_element_type=jnp.float32)
        h = jnp.maximum(a + b_ref[...], 0.0)                # (h_i, TILE_N) f32
        if i + 1 < n_hidden:
            h_mm = h.astype(mxu_dtype)

    # ---- output_layer (out_features == 1): keep it off the MXU ----
    # VPU multiply + sublane (XLU) reduction -> (1, TILE_N) lane-dense row.
    logit = jnp.sum(h * w_out_ref[...], axis=0, keepdims=True) + b_out_ref[...]
    soft = pl.reciprocal(1.0 + jnp.exp(-logit), approx=True)   # exp + rcp on EUP

    soft_ref[...] = soft * mask                             # lane-dense store


def _vmem_capacity_bytes():
    """Physical VMEM of the attached TPU (v5e/v6e: 128 MiB, v7x: 64 MiB)."""
    try:
        cap = getattr(pltpu.get_tpu_info(), "vmem_capacity_bytes", None)
        if cap:
            return int(cap)
    except Exception:
        pass
    return 64 * 1024 * 1024          # conservative (v7x-sized) fallback


def generator_forward(x, mask, params, use_hard_mask=True, *,
                      tile_n=16384, x_buffers=2, mxu_dtype=jnp.bfloat16):
    """x: (B, S, D), mask: (B, S) -> (hard*mask, soft*mask) of shape (B, S)."""
    (w_enc, b_enc), hidden, (w_out, b_out) = params
    B, S, D = x.shape
    N = B * S
    emb = int(w_enc.shape[0])
    hidden_sizes = [int(w.shape[0]) for w, _ in hidden]

    # ---- per-generation tiling / VMEM budget ----
    vmem_cap = _vmem_capacity_bytes()
    # 96 MiB on 128-MiB parts (v5e/v6e), 48 MiB on v7x's 64 MiB.
    vmem_limit = min((vmem_cap * 3) // 4, 96 * 1024 * 1024)
    # Rough live bytes/row: double-buffered f32 x tile + mask/out tiles +
    # f32+bf16 activation stack; weight buffers are negligible.
    per_row = 2 * D * 4 + 16 + 6 * (emb + sum(hidden_sizes)) + 32
    budget_rows = max(128, ((vmem_limit // 2) // per_row) // 128 * 128)

    n128 = _round_up(N, 128)
    TILE_N = min(_round_up(max(tile_n, 128), 128), n128, budget_rows)
    if n128 >= 256:
        # Keep at least two grid steps so v7x's second TensorCore gets work.
        TILE_N = min(TILE_N, _round_up(-(-n128 // 2), 128))
    TILE_N = max(TILE_N, 128)
    num_tiles = -(-N // TILE_N)
    N_pad = num_tiles * TILE_N

    mask_f = mask.astype(jnp.float32)

    # x goes in row-major f32 exactly as it lives in HBM (free reshape; no
    # wrapper cast / transpose / pad pass over the big activation).  Any block
    # padding in the ragged last tile only pollutes its own lanes (all kernel
    # reductions are per-column) and is sliced away below.
    x2d = x.reshape(N, D).astype(jnp.float32)
    m_row = mask_f.reshape(1, N)
    if N_pad != N:                                   # tiny: 4 B/row, mask only
        m_row = jnp.pad(m_row, ((0, 0), (0, N_pad - N)))

    # Weights stay in PyTorch (out, in) layout -> used directly as W @ h.
    flat = [x2d, m_row,
            w_enc.astype(jnp.float32), b_enc.reshape(-1, 1).astype(jnp.float32)]
    for w, b in hidden:
        flat += [w.astype(mxu_dtype), b.reshape(-1, 1).astype(jnp.float32)]
    flat += [w_out.reshape(-1, 1).astype(jnp.float32),     # (h_last, 1) column
             b_out.reshape(1, 1).astype(jnp.float32)]

    # Optional deeper buffering on the one streamed input (only knob worth
    # touching if a trace still shows exposed DMA on the x stream).
    x_spec_kwargs = {}
    if x_buffers > 2:
        x_spec_kwargs["pipeline_mode"] = pl.Buffered(x_buffers)
    in_specs = [
        pl.BlockSpec((TILE_N, D), lambda i: (i, 0), **x_spec_kwargs),  # x tile
        pl.BlockSpec((1, TILE_N), lambda i: (0, i)),                   # mask
    ]
    # Weights/biases: full-array blocks, VMEM-resident across all grid steps.
    in_specs += [pl.BlockSpec(a.shape, lambda i: (0, 0)) for a in flat[2:]]

    out_specs = pl.BlockSpec((1, TILE_N), lambda i: (0, i))
    out_shape = jax.ShapeDtypeStruct((1, N_pad), jnp.float32)

    matmul_flops = 2 * N_pad * (int(w_enc.size)
                                + sum(int(w.size) for w, _ in hidden)
                                + int(w_out.size))
    bytes_accessed = sum(int(a.size) * a.dtype.itemsize for a in flat) + N_pad * 4
    cost = pl.CostEstimate(flops=matmul_flops, transcendentals=N_pad,
                           bytes_accessed=bytes_accessed)

    kernel = functools.partial(_generator_kernel, len(hidden), mxu_dtype)
    soft_row = pl.pallas_call(
        kernel,
        grid=(num_tiles,),
        in_specs=in_specs,
        out_specs=out_specs,
        out_shape=out_shape,
        compiler_params=pltpu.CompilerParams(
            dimension_semantics=("parallel",),    # megacore sharding on v7x
            vmem_limit_bytes=vmem_limit),
        cost_estimate=cost,
    )(*flat)

    soft = soft_row[0, :N].reshape(B, S)                   # already mask-applied
    if use_hard_mask:
        hard = jnp.floor(soft + 0.5) * mask_f              # cheap XLA epilogue
        return hard, soft
    return soft


def _init_params(key, in_dim, embedding_size, hidden_units):
    """Deterministic synthetic parameters in PyTorch (out, in) layout."""
    def linear(k, fan_in, fan_out):
        kw, kb = jax.random.split(k)
        s = float(fan_in) ** -0.5
        w = jax.random.uniform(kw, (fan_out, fan_in), jnp.float32, -s, s)
        b = jax.random.uniform(kb, (fan_out,), jnp.float32, -s, s)
        return w, b

    keys = jax.random.split(key, len(hidden_units) + 2)
    enc = linear(keys[0], in_dim, embedding_size)
    hidden = []
    prev = embedding_size
    for i, n_units in enumerate(hidden_units):
        hidden.append(linear(keys[1 + i], prev, n_units))
        prev = n_units
    out = linear(keys[-1], prev, 1)
    return enc, hidden, out


def _reference(x, mask, params, mxu_dtype=jnp.bfloat16):
    """Pure-JAX reference with the same f32-encoder / bf16-hidden math."""
    (w_enc, b_enc), hidden, (w_out, b_out) = params
    m = mask.astype(jnp.float32)
    h = jnp.einsum("bsd,ed->bse", x, w_enc, preferred_element_type=jnp.float32)
    h = jnp.maximum(h + b_enc, 0.0) * m[..., None]
    for w, b in hidden:
        h = jnp.einsum("bsi,oi->bso", h.astype(mxu_dtype), w.astype(mxu_dtype),
                       preferred_element_type=jnp.float32)
        h = jnp.maximum(h + b, 0.0)
    logit = jnp.einsum("bsi,oi->bso", h, w_out,
                       preferred_element_type=jnp.float32) + b_out
    soft = (1.0 / (1.0 + jnp.exp(-logit)))[..., 0]
    hard = jnp.floor(soft + 0.5)
    return hard * m, soft * m


if __name__ == "__main__":
    B, S, D = 2, 8, 16
    embedding_size = 32
    hidden_units = [32, 16]

    key = jax.random.PRNGKey(0)
    k_x, k_m, k_p = jax.random.split(key, 3)

    x = jax.random.normal(k_x, (B, S, D), jnp.float32)
    mask = (jax.random.uniform(k_m, (B, S)) > 0.3).astype(jnp.float32)
    params = _init_params(k_p, D, embedding_size, hidden_units)

    hard, soft = generator_forward(x, mask, params, use_hard_mask=True)
    jax.block_until_ready((hard, soft))

    ref_hard, ref_soft = _reference(x, mask, params)
    assert soft.shape == (B, S) and hard.shape == (B, S)
    assert jnp.allclose(soft, ref_soft, atol=2e-3), "soft mask mismatch"
    # floor(soft + 0.5) is discontinuous at soft == 0.5; compare the hard mask
    # only away from that boundary (approx-reciprocal / bf16 rounding jitter).
    away_from_tie = jnp.abs(ref_soft - 0.5) > 1e-2
    assert bool(jnp.all(jnp.where(away_from_tie, hard == ref_hard, True))), \
        "hard mask mismatch"

    # soft-only path (no hard-mask work at all)
    soft_only = generator_forward(x, mask, params, use_hard_mask=False)
    jax.block_until_ready(soft_only)
    assert jnp.allclose(soft_only, ref_soft, atol=2e-3), "soft-only mismatch"

    print("KERNEL_OK")
</pallas_src>

<mosaic_0001>
module attributes {stable_mosaic.version = 11 : i64} {
  func.func @_generator_kernel(%arg0: i32, %arg1: memref<128x16xf32, #tpu.memory_space<vmem>>, %arg2: memref<1x128xf32, #tpu.memory_space<vmem>>, %arg3: memref<32x16xf32, #tpu.memory_space<vmem>>, %arg4: memref<32x1xf32, #tpu.memory_space<vmem>>, %arg5: memref<32x32xbf16, #tpu.memory_space<vmem>>, %arg6: memref<32x1xf32, #tpu.memory_space<vmem>>, %arg7: memref<16x32xbf16, #tpu.memory_space<vmem>>, %arg8: memref<16x1xf32, #tpu.memory_space<vmem>>, %arg9: memref<16x1xf32, #tpu.memory_space<vmem>>, %arg10: memref<1x1xf32, #tpu.memory_space<vmem>>, %arg11: memref<1x128xf32, #tpu.memory_space<vmem>>) attributes {dimension_semantics = [#tpu.dimension_semantics<parallel>], iteration_bounds = array<i64: 1>, scalar_prefetch = 0 : i64, scratch_operands = 0 : i64, tpu.core_type = #tpu.core_type<tc>, window_params = [{transform_indices = @transform_0, window_bounds = array<i64: 128, 16>}, {transform_indices = @transform_1, window_bounds = array<i64: 1, 128>}, {pipeline_mode = #tpu.pipeline_mode<synchronous>, transform_indices = @transform_2, window_bounds = array<i64: 32, 16>}, {pipeline_mode = #tpu.pipeline_mode<synchronous>, transform_indices = @transform_3, window_bounds = array<i64: 32, 1>}, {pipeline_mode = #tpu.pipeline_mode<synchronous>, transform_indices = @transform_4, window_bounds = array<i64: 32, 32>}, {pipeline_mode = #tpu.pipeline_mode<synchronous>, transform_indices = @transform_5, window_bounds = array<i64: 32, 1>}, {pipeline_mode = #tpu.pipeline_mode<synchronous>, transform_indices = @transform_6, window_bounds = array<i64: 16, 32>}, {pipeline_mode = #tpu.pipeline_mode<synchronous>, transform_indices = @transform_7, window_bounds = array<i64: 16, 1>}, {pipeline_mode = #tpu.pipeline_mode<synchronous>, transform_indices = @transform_8, window_bounds = array<i64: 16, 1>}, {pipeline_mode = #tpu.pipeline_mode<synchronous>, transform_indices = @transform_9, window_bounds = array<i64: 1, 1>}, {transform_indices = @transform_10, window_bounds = array<i64: 1, 128>}]} {
    %c0 = arith.constant 0 : index
    %c0_0 = arith.constant 0 : index
    %0 = vector.load %arg2[%c0, %c0_0] : memref<1x128xf32, #tpu.memory_space<vmem>>, vector<1x128xf32>
    %c0_1 = arith.constant 0 : index
    %c0_2 = arith.constant 0 : index
    %1 = vector.load %arg3[%c0_1, %c0_2] : memref<32x16xf32, #tpu.memory_space<vmem>>, vector<32x16xf32>
    %c0_3 = arith.constant 0 : index
    %c0_4 = arith.constant 0 : index
    %2 = vector.load %arg1[%c0_3, %c0_4] : memref<128x16xf32, #tpu.memory_space<vmem>>, vector<128x16xf32>
    %cst = arith.constant dense<0.000000e+00> : vector<32x128xf32>
    %3 = tpu.matmul %1, %2, %cst {dimension_numbers = #tpu.dot_dimension_numbers<[1], [1], [0], [0], [0, 0, 1, 0], [], []>} : vector<32x16xf32>, vector<128x16xf32>, vector<32x128xf32> -> vector<32x128xf32>
    %c0_5 = arith.constant 0 : index
    %c0_6 = arith.constant 0 : index
    %4 = vector.load %arg4[%c0_5, %c0_6] : memref<32x1xf32, #tpu.memory_space<vmem>>, vector<32x1xf32>
    %5 = vector.broadcast %4 : vector<32x1xf32> to vector<32x128xf32>
    %6 = arith.addf %3, %5 : vector<32x128xf32>
    %cst_7 = arith.constant 0.000000e+00 : f32
    %7 = vector.broadcast %cst_7 : f32 to vector<32x128xf32>
    %8 = arith.maximumf %6, %7 : vector<32x128xf32>
    %9 = vector.broadcast %0 : vector<1x128xf32> to vector<32x128xf32>
    %10 = arith.mulf %8, %9 : vector<32x128xf32>
    %11 = arith.truncf %10 : vector<32x128xf32> to vector<32x128xbf16>
    %c0_8 = arith.constant 0 : index
    %c0_9 = arith.constant 0 : index
    %12 = vector.load %arg5[%c0_8, %c0_9] : memref<32x32xbf16, #tpu.memory_space<vmem>>, vector<32x32xbf16>
    %cst_10 = arith.constant dense<0.000000e+00> : vector<32x128xf32>
    %13 = tpu.matmul %12, %11, %cst_10 {dimension_numbers = #tpu.dot_dimension_numbers<[1], [0], [0], [1], [0, 0, 1, 1], [], []>} : vector<32x32xbf16>, vector<32x128xbf16>, vector<32x128xf32> -> vector<32x128xf32>
    %c0_11 = arith.constant 0 : index
    %c0_12 = arith.constant 0 : index
    %14 = vector.load %arg6[%c0_11, %c0_12] : memref<32x1xf32, #tpu.memory_space<vmem>>, vector<32x1xf32>
    %15 = vector.broadcast %14 : vector<32x1xf32> to vector<32x128xf32>
    %16 = arith.addf %13, %15 : vector<32x128xf32>
    %cst_13 = arith.constant 0.000000e+00 : f32
    %17 = vector.broadcast %cst_13 : f32 to vector<32x128xf32>
    %18 = arith.maximumf %16, %17 : vector<32x128xf32>
    %19 = arith.truncf %18 : vector<32x128xf32> to vector<32x128xbf16>
    %c0_14 = arith.constant 0 : index
    %c0_15 = arith.constant 0 : index
    %20 = vector.load %arg7[%c0_14, %c0_15] : memref<16x32xbf16, #tpu.memory_space<vmem>>, vector<16x32xbf16>
    %cst_16 = arith.constant dense<0.000000e+00> : vector<16x128xf32>
    %21 = tpu.matmul %20, %19, %cst_16 {dimension_numbers = #tpu.dot_dimension_numbers<[1], [0], [0], [1], [0, 0, 1, 1], [], []>} : vector<16x32xbf16>, vector<32x128xbf16>, vector<16x128xf32> -> vector<16x128xf32>
    %c0_17 = arith.constant 0 : index
    %c0_18 = arith.constant 0 : index
    %22 = vector.load %arg8[%c0_17, %c0_18] : memref<16x1xf32, #tpu.memory_space<vmem>>, vector<16x1xf32>
    %23 = vector.broadcast %22 : vector<16x1xf32> to vector<16x128xf32>
    %24 = arith.addf %21, %23 : vector<16x128xf32>
    %cst_19 = arith.constant 0.000000e+00 : f32
    %25 = vector.broadcast %cst_19 : f32 to vector<16x128xf32>
    %26 = arith.maximumf %24, %25 : vector<16x128xf32>
    %c0_20 = arith.constant 0 : index
    %c0_21 = arith.constant 0 : index
    %27 = vector.load %arg9[%c0_20, %c0_21] : memref<16x1xf32, #tpu.memory_space<vmem>>, vector<16x1xf32>
    %28 = vector.broadcast %27 : vector<16x1xf32> to vector<16x128xf32>
    %29 = arith.mulf %26, %28 : vector<16x128xf32>
    %cst_22 = arith.constant dense<0.000000e+00> : vector<128xf32>
    %30 = vector.multi_reduction <add>, %29, %cst_22 [0] : vector<16x128xf32> to vector<128xf32>
    %31 = vector.shape_cast %30 : vector<128xf32> to vector<1x128xf32>
    %c0_23 = arith.constant 0 : index
    %c0_24 = arith.constant 0 : index
    %32 = vector.load %arg10[%c0_23, %c0_24] : memref<1x1xf32, #tpu.memory_space<vmem>>, vector<1x1xf32>
    %33 = vector.broadcast %32 : vector<1x1xf32> to vector<1x128xf32>
    %34 = arith.addf %31, %33 : vector<1x128xf32>
    %cst_25 = arith.constant 0.000000e+00 : f32
    %35 = vector.broadcast %cst_25 : f32 to vector<1x128xf32>
    %36 = arith.subf %35, %34 : vector<1x128xf32>
    %37 = math.exp %36 : vector<1x128xf32>
    %cst_26 = arith.constant 1.000000e+00 : f32
    %38 = vector.broadcast %cst_26 : f32 to vector<1x128xf32>
    %39 = arith.addf %38, %37 : vector<1x128xf32>
    %40 = tpu.reciprocal %39 {approx = true} : vector<1x128xf32> -> vector<1x128xf32>
    %41 = arith.mulf %40, %0 : vector<1x128xf32>
    %c0_27 = arith.constant 0 : index
    %c0_28 = arith.constant 0 : index
    %42 = vector.load %arg11[%c0_27, %c0_28] : memref<1x128xf32, #tpu.memory_space<vmem>>, vector<1x128xf32>
    tpu.vector_store %arg11[%c0_27, %c0_28], %41 {strides = array<i32>} : memref<1x128xf32, #tpu.memory_space<vmem>>, vector<1x128xf32>,
    return
  }
  func.func @transform_0(%arg0: i32) -> (i32, i32) {
    %c0_i32 = arith.constant 0 : i32
    %c0_i32_0 = arith.constant 0 : i32
    return %arg0, %c0_i32 : i32, i32
  }
  func.func @transform_1(%arg0: i32) -> (i32, i32) {
    %c0_i32 = arith.constant 0 : i32
    %c0_i32_0 = arith.constant 0 : i32
    return %c0_i32, %arg0 : i32, i32
  }
  func.func @transform_2(%arg0: i32) -> (i32, i32) {
    %c0_i32 = arith.constant 0 : i32
    %c0_i32_0 = arith.constant 0 : i32
    %c0_i32_1 = arith.constant 0 : i32
    return %c0_i32, %c0_i32_0 : i32, i32
  }
  func.func @transform_3(%arg0: i32) -> (i32, i32) {
    %c0_i32 = arith.constant 0 : i32
    %c0_i32_0 = arith.constant 0 : i32
    %c0_i32_1 = arith.constant 0 : i32
    return %c0_i32, %c0_i32_0 : i32, i32
  }
  func.func @transform_4(%arg0: i32) -> (i32, i32) {
    %c0_i32 = arith.constant 0 : i32
    %c0_i32_0 = arith.constant 0 : i32
    %c0_i32_1 = arith.constant 0 : i32
    return %c0_i32, %c0_i32_0 : i32, i32
  }
  func.func @transform_5(%arg0: i32) -> (i32, i32) {
    %c0_i32 = arith.constant 0 : i32
    %c0_i32_0 = arith.constant 0 : i32
    %c0_i32_1 = arith.constant 0 : i32
    return %c0_i32, %c0_i32_0 : i32, i32
  }
  func.func @transform_6(%arg0: i32) -> (i32, i32) {
    %c0_i32 = arith.constant 0 : i32
    %c0_i32_0 = arith.constant 0 : i32
    %c0_i32_1 = arith.constant 0 : i32
    return %c0_i32, %c0_i32_0 : i32, i32
  }
  func.func @transform_7(%arg0: i32) -> (i32, i32) {
    %c0_i32 = arith.constant 0 : i32
    %c0_i32_0 = arith.constant 0 : i32
    %c0_i32_1 = arith.constant 0 : i32
    return %c0_i32, %c0_i32_0 : i32, i32
  }
  func.func @transform_8(%arg0: i32) -> (i32, i32) {
    %c0_i32 = arith.constant 0 : i32
    %c0_i32_0 = arith.constant 0 : i32
    %c0_i32_1 = arith.constant 0 : i32
    return %c0_i32, %c0_i32_0 : i32, i32
  }
  func.func @transform_9(%arg0: i32) -> (i32, i32) {
    %c0_i32 = arith.constant 0 : i32
    %c0_i32_0 = arith.constant 0 : i32
    %c0_i32_1 = arith.constant 0 : i32
    return %c0_i32, %c0_i32_0 : i32, i32
  }
  func.func @transform_10(%arg0: i32) -> (i32, i32) {
    %c0_i32 = arith.constant 0 : i32
    %c0_i32_0 = arith.constant 0 : i32
    return %c0_i32, %arg0 : i32, i32
  }
}

</mosaic_0001>

<bundles_post_ra>
// kernel: tpu_custom_call.1
= control target key start
LH: loop header
LB: loop body
LE: loop exit
PB: predicated region body
PF: predicated region fallthrough
CT: control target
= control target key end

     0   :  { %s829_s0 = inlined_call_operand.vmem [shape: f32[16,16], index: 0, kind: input, shape index: {}]   ;;  %s830_s1 = inlined_call_operand.vmem [shape: f32[1,128], index: 1, kind: input, shape index: {}]   ;;  %s831_s2 = inlined_call_operand.vmem [shape: f32[32,16], index: 2, kind: input, shape index: {}]   ;;  %s832_s3 = inlined_call_operand.vmem [shape: f32[32,1], index: 3, kind: input, shape index: {}]   ;;  %s833_s4 = inlined_call_operand.vmem [shape: bf16[32,32], index: 4, kind: input, shape index: {}]   ;;  %s834_s5 = inlined_call_operand.vmem [shape: f32[32,1], index: 5, kind: input, shape index: {}]   ;;  %s835_s6 = inlined_call_operand.vmem [shape: bf16[16,32], index: 6, kind: input, shape index: {}]   ;;  %s836_s7 = inlined_call_operand.vmem [shape: f32[16,1], index: 7, kind: input, shape index: {}]   ;;  %s837_s8 = inlined_call_operand.vmem [shape: f32[16,1], index: 8, kind: input, shape index: {}]   ;;  %s838_s9 = inlined_call_operand.<no memory space> [shape: f32[1,1], index: 9, kind: input, shape index: {}]   ;;  %s839_s10 = inlined_call_operand.hbm [shape: f32[1,128], index: 10, kind: output, shape index: {}]  }
   0x1   :  { %v15_v0 = vstv %s838_s9 }
   0x2   :  { %16 = vst [vmem:[#allocation2] sm:$0x1] %v15_v0 }
   0x3   :  { %v59_v1 = vld [vmem:[%s829_s0 + $0x78] sm:$0xff]  ;;  %vm84_vm0 = vcmask 130048   ;;  %v58_v2 = vld [vmem:[%s829_s0 + $0x70] sm:$0xff]  ;;  %v606_v3 = vmov 0   ;;  %v57_v4 = vld [vmem:[%s829_s0 + $0x68] sm:$0xff] }
   0x4   :  { %517 = vmatprep.subr.msk.mxu0 %vm84_vm0, %v59_v1  ;;  %575 = vset.pattern.permute.xlu0 %v606_v3  ;;  %v40_v5 = vld [vmem:[%s831_s2] sm:$0xff]  ;;  %v62_v6 = vld [vmem:[%s832_s3 + $0x10] sm:$0xff]  ;;  %v63_v9 = vld [vmem:[%s832_s3 + $0x18] sm:$0xff] }
   0x5   :  { %518 = vmatpush3.xpose.msk.msra.mxu0 %vm84_vm0, %v59_v1  ;;  %576 = vset.pattern.permute.xlu1 %v606_v3  ;;  %v60_v7 = vld [vmem:[%s832_s3] sm:$0xff]  ;;  %v61_v10 = vld [vmem:[%s832_s3 + $0x8] sm:$0xff]  ;;  %v55_v11 = vld [vmem:[%s829_s0 + $0x58] sm:$0xff] }
   0x6   :  { %519 = vmatprep.subr.msk.mxu0 %vm84_vm0, %v58_v2  ;;  %549 = vmatprep.mubr.msk.f32.mxu0 %vm84_vm0, %v40_v5  ;;  %v56_v8 = vld [vmem:[%s829_s0 + $0x60] sm:$0xff]  ;;  %v252_v12 = vld [vmem:[%s834_s5 + $0x10] sm:$0xff]  ;;  %v253_v13 = vld [vmem:[%s834_s5 + $0x18] sm:$0xff] }
   0x7   :  { %76 = vperm.xlu0 %575, %v62_v6   ;;  %66 = vperm.xlu1 %576, %v60_v7  }
   0x9   :  { %520 = vmatpush3.xpose.msk.msra.mxu0 %vm84_vm0, %v58_v2 }
   0xa   :  { %521 = vmatprep.subr.msk.mxu0 %vm84_vm0, %v57_v4 }
   0xb   :  { %81 = vperm.xlu0 %575, %v63_v9   ;;  %71 = vperm.xlu1 %576, %v61_v10  }
   0xd   :  { %522 = vmatpush3.xpose.msk.msra.mxu0 %vm84_vm0, %v57_v4 }
   0xe   :  { %523 = vmatprep.subr.msk.mxu0 %vm84_vm0, %v56_v8 }
   0xf   :  { %17 = vsyncpa [#allocation4], 0  ;;  %266 = vperm.xlu0 %575, %v252_v12   ;;  %v54_v14 = vld [vmem:[%s829_s0 + $0x50] sm:$0xff]  ;;  %v250_v15 = vld [vmem:[%s834_s5] sm:$0xff]  ;;  %271 = vperm.xlu1 %576, %v253_v13   ;;  %vm284_vm1 = vcmask 261120   ;;  %v235_v37 = vlaneseq  ;;  %v607_v0 = vmov 0.0  }
  0x10   :  { %v251_v16 = vld [vmem:[%s834_s5 + $0x8] sm:$0xff]  ;;  %v348_v18 = vld [vmem:[%s836_s7] sm:$0xff]  ;;  %v51_v23 = vld [vmem:[%s829_s0 + $0x38] sm:$0xff]  ;;  %vm608_vm2 = vmmov 0  }
  0x11   :  { %524 = vmatpush3.xpose.msk.msra.mxu0 %vm84_vm0, %v56_v8  ;;  %v53_v17 = vld [vmem:[%s829_s0 + $0x48] sm:$0xff]  ;;  %v52_v20 = vld [vmem:[%s829_s0 + $0x40] sm:$0xff]  ;;  %v50_v25 = vld [vmem:[%s829_s0 + $0x30] sm:$0xff]  ;;  %v804_v40 = vshrl.u32 %v235_v37, 7 }
  0x12   :  { %525 = vmatprep.subr.msk.mxu0 %vm84_vm0, %v55_v11  ;;  %v349_v19 = vld [vmem:[%s836_s7 + $0x8] sm:$0xff]  ;;  %v411_v21 = vld [vmem:[%s837_s8] sm:$0xff]  ;;  %v47_v28 = vld [vmem:[%s829_s0 + $0x18] sm:$0xff] }
  0x13   :  { %256 = vperm.xlu0 %575, %v250_v15   ;;  %261 = vperm.xlu1 %576, %v251_v16   ;;  %v412_v22 = vld [vmem:[%s837_s8 + $0x8] sm:$0xff]  ;;  %v432_v24 = vld [vmem:[#allocation2] sm:$0x1]  ;;  %v46_v29 = vld [vmem:[%s829_s0 + $0x10] sm:$0xff]  ;;  %v237_v47 = vsub.s32 0, %v804_v40 }
  0x14   :  { %v49_v26 = vld [vmem:[%s829_s0 + $0x28] sm:$0xff]  ;;  %v48_v27 = vld [vmem:[%s829_s0 + $0x20] sm:$0xff]  ;;  %v42_v33 = vld [vmem:[%s831_s2 + $0x10] sm:$0xff] }
  0x15   :  { %526 = vmatpush3.xpose.msk.msra.mxu0 %vm84_vm0, %v55_v11  ;;  %v45_v30 = vld [vmem:[%s829_s0 + $0x8] sm:$0xff]  ;;  %v44_v31 = vld [vmem:[%s829_s0] sm:$0xff]  ;;  %v43_v34 = vld [vmem:[%s831_s2 + $0x18] sm:$0xff] }
  0x16   :  { %527 = vmatprep.subr.msk.mxu0 %vm84_vm0, %v54_v14  ;;  %v41_v32 = vld [vmem:[%s831_s2 + $0x8] sm:$0xff]  ;;  %v577_v35 = vld [vmem:[%s833_s4] sm:$0xff]  }
  0x17   :  { %352 = vperm.xlu0 %575, %v348_v18   ;;  %357 = vperm.xlu1 %576, %v349_v19   ;;  %v810_v49 = vld [vmem:[%s830_s1] sm:$0x1]  ;;  %v578_v63 = vld [vmem:[%s833_s4 + $0x8] sm:$0xff]  }
  0x18   :  { %559 = vmatprep.mubr.msk.bf16.mxu1 %vm284_vm1, %v577_v35  ;;  %v238_v55 = vrot.slane %v810_v49, %v237_v47  ;;  %v579_v19 = vld [vmem:[%s835_s6] sm:$0xff]   ;;  %s609_s6 = smov [#allocation3]  }
  0x19   :  { %528 = vmatpush3.xpose.msk.msra.mxu0 %vm84_vm0, %v54_v14  ;;  %s456_s13 = sshll.u32 %s609_s6, 4  ;;  %s457_s13 = int_to_ptr.vmem [resolvable:$true] %s456_s13 }
  0x1a   :  { %529 = vmatprep.subr.msk.mxu0 %vm84_vm0, %v53_v17  ;;  %s584_s14 = scalar_lea.vmem %s457_s13, 16  ;;  %s588_s15 = scalar_lea.vmem %s457_s13, 32 }
  0x1b   :  { %415 = vperm.xlu0 %575, %v411_v21   ;;  %420 = vperm.xlu1 %576, %v412_v22   ;;  %p585_p0 = scmp.ne.s32.totalorder %s457_s13, %s584_s14  ;;  %p589_p1 = scmp.lt.s32.totalorder %s457_s13, %s457_s13 }
  0x1c   :  { %p590_p2 = scmp.lt.s32.totalorder %s588_s15, %s584_s14 }
  0x1d   :  { %530 = vmatpush3.xpose.msk.msra.mxu0 %vm84_vm0, %v53_v17 }
  0x1e   :  { %531 = vmatprep.subr.msk.mxu0 %vm84_vm0, %v52_v20  ;;  %p591_p3 = por %p590_p2, %p589_p1 }
  0x1f   :  { %435 = vperm.xlu0 %575, %v432_v24  }
  0x20   :  { %p592_p4 = pnand %p591_p3, %p585_p0 }
  0x21   :  { %532 = vmatpush3.xpose.msk.msra.mxu0 %vm84_vm0, %v52_v20 }
  0x22   :  { %533 = vmatprep.subr.msk.mxu0 %vm84_vm0, %v51_v23 }
  0x25   :  { %534 = vmatpush3.xpose.msk.msra.mxu0 %vm84_vm0, %v51_v23 }
  0x26   :  { %535 = vmatprep.subr.msk.mxu0 %vm84_vm0, %v50_v25 }
  0x29   :  { %536 = vmatpush3.xpose.msk.msra.mxu0 %vm84_vm0, %v50_v25 }
  0x2a   :  { %537 = vmatprep.subr.msk.mxu0 %vm84_vm0, %v49_v26 }
  0x2d   :  { %538 = vmatpush3.xpose.msk.msra.mxu0 %vm84_vm0, %v49_v26 }
  0x2e   :  { %539 = vmatprep.subr.msk.mxu0 %vm84_vm0, %v48_v27 }
  0x31   :  { %540 = vmatpush3.xpose.msk.msra.mxu0 %vm84_vm0, %v48_v27 }
  0x32   :  { %541 = vmatprep.subr.msk.mxu0 %vm84_vm0, %v47_v28 }
  0x35   :  { %542 = vmatpush3.xpose.msk.msra.mxu0 %vm84_vm0, %v47_v28 }
  0x36   :  { %543 = vmatprep.subr.msk.mxu0 %vm84_vm0, %v46_v29 }
  0x39   :  { %544 = vmatpush3.xpose.msk.msra.mxu0 %vm84_vm0, %v46_v29 }
  0x3a   :  { %545 = vmatprep.subr.msk.mxu0 %vm84_vm0, %v45_v30 }
  0x3d   :  { %546 = vmatpush3.xpose.msk.msra.mxu0 %vm84_vm0, %v45_v30 }
  0x3e   :  { %547 = vmatprep.subr.msk.mxu0 %vm84_vm0, %v44_v31 }
  0x41   :  { %548 = vmatpush3.xpose.msk.msra.mxu0 %vm84_vm0, %v44_v31 }
  0x44   :  { %550 = vmatmul.mubr.msk.f32.vlgmr.msra.gmra.mxu0 %vm84_vm0, %v41_v32 }
  0x45   :  { %552 = vmatprep.mubr.msk.f32.mxu0 %vm84_vm0, %v42_v33 }
  0x48   :  { %553 = vmatmul.mubr.msk.f32.gmra.mxu0 %vm84_vm0, %v43_v34 }
  0x82   :  { %v77_v36 = vpop.permute.xlu0 %76  ;;  %v67_v38 = vpop.permute.xlu1 %66 }
  0x86   :  { %v82_v42 = vpop.permute.xlu0 %81  ;;  %v72_v44 = vpop.permute.xlu1 %71 }
  0x8a   :  { %v267_v1 = vpop.permute.xlu0 %266  ;;  %v272_v2 = vpop.permute.xlu1 %271 }
  0x8e   :  { %v257_v7 = vpop.permute.xlu0 %256  ;;  %v262_v9 = vpop.permute.xlu1 %261 }
  0x92   :  { %v353_v20 = vpop.permute.xlu0 %352  ;;  %v358_v23 = vpop.permute.xlu1 %357 }
  0x96   :  { %v416_v30 = vpop.permute.xlu0 %415  ;;  %v421_v31 = vpop.permute.xlu1 %420 }
 0x104   :  { %v551_v39 = vpop.f32.mrf.mxu0 }
 0x105   :  { %v217_v46 = vadd.f32 %v551_v39, %v72_v44  ;;  %v436_v39 = vpop.permute.xlu0 %435 }
 0x106   :  { %v211_v41 = vpop.f32.mrf.mxu0 }
 0x107   :  { %v212_v43 = vadd.f32 %v211_v41, %v67_v38  ;;  %v231_v54 = vmax.f32 %v217_v46, 0.0 }
 0x108   :  { %v554_v45 = vpop.f32.mrf.mxu0 }
 0x109   :  { %v227_v48 = vadd.f32 %v554_v45, %v82_v42  ;;  %v230_v51 = vmax.f32 %v212_v43, 0.0  ;;  %v241_v61 = vmul.f32 %v238_v55, %v231_v54  ;;  %v441_v42 = vrot.slane %v436_v39, %v237_v47 }
 0x10a   :  { %v221_v50 = vpop.f32.mrf.mxu0 }
 0x10b   :  { %v233_v52 = vmax.f32 %v227_v48, 0.0  ;;  %v222_v53 = vadd.f32 %v221_v50, %v77_v36  ;;  %v240_v57 = vmul.f32 %v238_v55, %v230_v51 }
 0x10d   :  { %v232_v56 = vmax.f32 %v222_v53, 0.0  ;;  %v243_v58 = vmul.f32 %v238_v55, %v233_v52  ;;  %v244_v62 = vpack.c.bf16 %v241_v61, %v240_v57 }
 0x10f   :  { %v242_v59 = vmul.f32 %v238_v55, %v232_v56 }
 0x111   :  { %v245_v60 = vpack.c.bf16 %v243_v58, %v242_v59 }
 0x113   :  { %555 = vmatprep.subr.bf16.mxu1 %v245_v60 }
 0x114   :  { %556 = vmatpush3.bf16.msra.mxu1 %v245_v60 }
 0x115   :  { %557 = vmatprep.subr.bf16.mxu1 %v244_v62 }
 0x118   :  { %558 = vmatpush3.bf16.msra.mxu1 %v244_v62 }
 0x119   :  { %563 = vmatprep.subr.bf16.mxu1 %v607_v0 }
 0x11b   :  { %560 = vmatmul.mubr.msk.bf16.vlgmr.msra.gmra.mxu1 %vm284_vm1, %v578_v63 }
 0x11c   :  { %567 = vmatprep.mubr.msk.bf16.mxu1 %vm608_vm2, %v607_v0 }
 0x1db   :  { %v561_v3 = vpop.f32.mrf.mxu1 }
 0x1dc   :  { %v334_v5 = vadd.f32 %v561_v3, %v267_v1 }
 0x1dd   :  { %v325_v4 = vpop.f32.mrf.mxu1 }
 0x1de   :  { %v342_v11 = vmax.f32 %v334_v5, 0.0  ;;  %v326_v12 = vadd.f32 %v325_v4, %v257_v7 }
 0x1df   :  { %v562_v6 = vpop.f32.mrf.mxu1 }
 0x1e0   :  { %v337_v8 = vadd.f32 %v562_v6, %v272_v2  ;;  %v340_v17 = vmax.f32 %v326_v12, 0.0 }
 0x1e1   :  { %v328_v10 = vpop.f32.mrf.mxu1 }
 0x1e2   :  { %v343_v13 = vmax.f32 %v337_v8, 0.0  ;;  %v329_v14 = vadd.f32 %v328_v10, %v262_v9 }
 0x1e4   :  { %v345_v15 = vpack.c.bf16 %v343_v13, %v342_v11  ;;  %v341_v16 = vmax.f32 %v329_v14, 0.0 }
 0x1e6   :  { %564 = vmatpush3.bf16.msra.mxu1 %v345_v15  ;;  %v344_v18 = vpack.c.bf16 %v341_v16, %v340_v17 }
 0x1e7   :  { %565 = vmatprep.subr.bf16.mxu1 %v607_v0 }
 0x1ea   :  { %566 = vmatpush3.bf16.msra.mxu1 %v344_v18 }
 0x1ed   :  { %568 = vmatmul.mubr.msk.bf16.vlgmr.msra.gmra.mxu1 %vm284_vm1, %v579_v19 }
 0x2ad   :  { %v402_v21 = vpop.f32.mrf.mxu1 }
 0x2ae   :  { %v403_v22 = vadd.f32 %v402_v21, %v353_v20 }
 0x2af   :  { %v569_v24 = vpop.f32.mrf.mxu1 }
 0x2b0   :  { %v409_v26 = vmax.f32 %v403_v22, 0.0 }
 0x2b1   :  { %v405_v25 = vpop.f32.mrf.mxu1 }
 0x2b2   :  { %v406_v27 = vadd.f32 %v405_v25, %v358_v23  ;;  %v423_v32 = vmul.f32 %v416_v30, %v409_v26 }
 0x2b3   :  { %v570_v28 = vpop.f32.mrf.mxu1 }
 0x2b4   :  { %v410_v29 = vmax.f32 %v406_v27, 0.0 }
 0x2b6   :  { %v424_v33 = vmul.f32 %v421_v31, %v410_v29 }
 0x2b8   :  { %v425_v34 = vadd.f32 %v424_v33, %v423_v32 }
 0x2ba   :  { %v426_v35 = vrot.slane %v425_v34, 4 }
 0x2bc   :  { %v427_v36 = vadd.f32 %v426_v35, %v425_v34 }
 0x2be   :  { %v428_v37 = vrot.slane %v427_v36, 2 }
 0x2c0   :  { %v429_v38 = vadd.f32 %v428_v37, %v427_v36 }
 0x2c2   :  { %v430_v41 = vrot.slane %v429_v38, 1 }
 0x2c4   :  { %v431_v43 = vadd.f32 %v430_v41, %v429_v38 }
 0x2c6   :  { %v442_v44 = vadd.f32 %v441_v42, %v431_v43 }
 0x2c8   :  { %v443_v45 = vsub.f32 0.0, %v442_v44 }
 0x2ca   :  { %v444_v46 = vmul.f32 1.442695, %v443_v45 }
 0x2cc   :  { %580 = vpow2.f32 %v444_v46 }
 0x2d9   :  { %v581_v48 = vpop.eup %580 }
 0x2da   :  { %v446_v50 = vadd.f32 1.0, %v581_v48 }
 0x2dc   :  { %582 = vrcp.f32 %v446_v50 }
 0x2e9   :  { %v583_v51 = vpop.eup %582 }
 0x2ea   :  { %v448_v52 = vmul.f32 %v583_v51, %v810_v49 }
 0x2ec   :  { %449 = vst [vmem:[#allocation3] sm:$0x1] %v448_v52 }
 0x2ed   :  { %595 = shalt.err (!%p592_p4)
}
 0x2ee   :  { %459 = dma.vmem_to_hbm [thread:$0]  %s457_s13, 16, %s839_s10, [#allocation4]  }
 0x2ef   :  { %604 = dma.done.wait [#allocation4], 16  }
 0x2f0   :  { %605 = vsyncadd [#allocation4], 4294967280 }
 0x2f1   :  { %463 = vsyncpa [#allocation4], 1 }

</bundles_post_ra>
